<compile_context>
chip_gen: v7x
topology: tpu7x:2x2x1
jax: 0.10.0
libtpu: 0.0.40
codegen_flags: <defaults>
</compile_context>

<pallas_src>
import functools

import jax
import jax.numpy as jnp
from jax import lax
from jax.experimental import pallas as pl
from jax.experimental.pallas import tpu as pltpu


def _mha_kernel(x_ref, wq_ref, bq_ref, wk_ref, bk_ref, wv_ref, bv_ref,
                wp_ref, bp_ref, out_ref, att_ref, acc_ref, *, head_dim):
    h = pl.program_id(1)

    x = x_ref[...]                       # (L, C), compute dtype (bf16 default)
    cdt = x.dtype
    scale = 1.0 / (head_dim ** 0.5)

    # Per-head projections: big C-contraction matmuls on the MXU, f32 accum.
    # Fold the 1/sqrt(D) scale into q (scales L*D elements, not L*L scores).
    q = (jnp.dot(x, wq_ref[...], preferred_element_type=jnp.float32)
         + bq_ref[...]) * scale                                  # (L, D)
    k = jnp.dot(x, wk_ref[...], preferred_element_type=jnp.float32) + bk_ref[...]
    v = jnp.dot(x, wv_ref[...], preferred_element_type=jnp.float32) + bv_ref[...]

    # scores = q @ k^T without materializing a transpose: contract head_dim.
    scores = lax.dot_general(
        q.astype(cdt), k.astype(cdt),
        dimension_numbers=(((1,), (1,)), ((), ())),
        preferred_element_type=jnp.float32)                      # (L, L)

    # Softmax in f32; denominator reciprocal goes to the EUP (free slot).
    scores = scores - jnp.max(scores, axis=-1, keepdims=True)
    e = jnp.exp(scores)
    probs = e * pl.reciprocal(jnp.sum(e, axis=-1, keepdims=True), approx=True)

    # Self-attention map ("weights" in the PyTorch module), one head per step.
    att_ref[...] = probs.astype(att_ref.dtype)

    # context_h = probs @ v_h ; its contribution to out = context_h @ Wp[h].
    ctx = jnp.dot(probs.astype(cdt), v.astype(cdt),
                  preferred_element_type=jnp.float32)            # (L, D)
    contrib = jnp.dot(ctx.astype(cdt), wp_ref[...],
                      preferred_element_type=jnp.float32)        # (L, C)

    @pl.when(h == 0)
    def _():
        acc_ref[...] = jnp.zeros_like(acc_ref)

    acc_ref[...] += contrib

    @pl.when(h == pl.num_programs(1) - 1)
    def _():
        out_ref[...] = (acc_ref[...] + bp_ref[...]).astype(out_ref.dtype)


def multi_head_attention(x, params, *, num_heads, compute_dtype=jnp.bfloat16):
    """x: (B, L, C). params: weights [in, out], biases (1, C). Returns (out, weights)."""
    B, L, C = x.shape
    D = C // num_heads
    out_dtype = x.dtype

    # Re-pack weights so each (batch, head) grid step only DMAs its head slice.
    def per_head_cols(w):                # (C, C) -> (H, C, D)
        return w.reshape(C, num_heads, D).transpose(1, 0, 2).astype(compute_dtype)

    wq = per_head_cols(params["wq"])
    wk = per_head_cols(params["wk"])
    wv = per_head_cols(params["wv"])
    wp = params["wp"].reshape(num_heads, D, C).astype(compute_dtype)   # row slices
    bq = params["bq"].reshape(num_heads, 1, D).astype(jnp.float32)
    bk = params["bk"].reshape(num_heads, 1, D).astype(jnp.float32)
    bv = params["bv"].reshape(num_heads, 1, D).astype(jnp.float32)
    bp = params["bp"].astype(jnp.float32)
    xc = x.astype(compute_dtype)

    kernel = functools.partial(_mha_kernel, head_dim=D)

    w_spec = pl.BlockSpec((None, C, D), lambda b, h: (h, 0, 0))
    b_spec = pl.BlockSpec((None, 1, D), lambda b, h: (h, 0, 0))

    out_shapes = (
        jax.ShapeDtypeStruct((B, L, C), out_dtype),
        jax.ShapeDtypeStruct((B, num_heads, L, L), jnp.float32),
    )

    return pl.pallas_call(
        kernel,
        out_shape=out_shapes,
        grid_spec=pltpu.PrefetchScalarGridSpec(
            num_scalar_prefetch=0,
            grid=(B, num_heads),
            in_specs=[
                pl.BlockSpec((None, L, C), lambda b, h: (b, 0, 0)),    # x
                w_spec, b_spec,                                        # Wq, bq
                w_spec, b_spec,                                        # Wk, bk
                w_spec, b_spec,                                        # Wv, bv
                pl.BlockSpec((None, D, C), lambda b, h: (h, 0, 0)),    # Wp
                pl.BlockSpec((1, C), lambda b, h: (0, 0)),             # bp
            ],
            out_specs=[
                pl.BlockSpec((None, L, C), lambda b, h: (b, 0, 0)),           # out
                pl.BlockSpec((None, None, L, L), lambda b, h: (b, h, 0, 0)),  # weights
            ],
            scratch_shapes=[pltpu.VMEM((L, C), jnp.float32)],
        ),
        compiler_params=pltpu.CompilerParams(
            dimension_semantics=("parallel", "arbitrary"),
            vmem_limit_bytes=64 * 1024 * 1024,
        ),
    )(xc, wq, bq, wk, bk, wv, bv, wp, bp)


def init_params(key, hidden_size):
    """Deterministic PyTorch-Linear-like init. Weights stored as [in, out]."""
    bound = 1.0 / (hidden_size ** 0.5)
    keys = jax.random.split(key, 8)
    names = ["wq", "bq", "wk", "bk", "wv", "bv", "wp", "bp"]
    params = {}
    for i, name in enumerate(names):
        if name.startswith("w"):
            shape = (hidden_size, hidden_size)
        else:
            shape = (1, hidden_size)
        params[name] = jax.random.uniform(
            keys[i], shape, dtype=jnp.float32, minval=-bound, maxval=bound)
    return params


if __name__ == "__main__":
    B, L, C = 2, 8, 32
    NUM_HEADS = 4

    key = jax.random.PRNGKey(0)
    kx, kp = jax.random.split(key)
    x = jax.random.normal(kx, (B, L, C), dtype=jnp.float32)
    params = init_params(kp, C)

    out, weights = multi_head_attention(x, params, num_heads=NUM_HEADS)
    jax.block_until_ready((out, weights))

    # Pure-JAX f32 reference (same math as the PyTorch module, eval mode).
    def ref(x, p):
        q = x @ p["wq"] + p["bq"][0]
        k = x @ p["wk"] + p["bk"][0]
        v = x @ p["wv"] + p["bv"][0]
        Dh = C // NUM_HEADS
        q = q.reshape(B, L, NUM_HEADS, Dh).transpose(0, 2, 1, 3)
        kT = k.reshape(B, L, NUM_HEADS, Dh).transpose(0, 2, 3, 1)
        v = v.reshape(B, L, NUM_HEADS, Dh).transpose(0, 2, 1, 3)
        s = jnp.einsum("bhld,bhdm->bhlm", q, kT) / (Dh ** 0.5)
        w = jax.nn.softmax(s, axis=-1)
        ctx = jnp.einsum("bhlm,bhmd->bhld", w, v).transpose(0, 2, 1, 3).reshape(B, L, C)
        o = ctx @ p["wp"] + p["bp"][0]
        return o, w

    out_ref, w_ref = ref(x, params)
    # bf16 MXU operands + approximate reciprocal -> tolerance loosened vs f32 ref.
    assert jnp.allclose(out, out_ref, atol=2e-2, rtol=2e-2), \
        float(jnp.max(jnp.abs(out - out_ref)))
    assert jnp.allclose(weights, w_ref, atol=2e-2, rtol=2e-2), \
        float(jnp.max(jnp.abs(weights - w_ref)))

    print("KERNEL_OK")
</pallas_src>

<mosaic_0001>
module attributes {stable_mosaic.version = 11 : i64} {
  func.func @_mha_kernel(%arg0: i32, %arg1: i32, %arg2: memref<1x8x32xbf16, #tpu.memory_space<vmem>>, %arg3: memref<1x32x8xbf16, #tpu.memory_space<vmem>>, %arg4: memref<1x1x8xf32, #tpu.memory_space<vmem>>, %arg5: memref<1x32x8xbf16, #tpu.memory_space<vmem>>, %arg6: memref<1x1x8xf32, #tpu.memory_space<vmem>>, %arg7: memref<1x32x8xbf16, #tpu.memory_space<vmem>>, %arg8: memref<1x1x8xf32, #tpu.memory_space<vmem>>, %arg9: memref<1x8x32xbf16, #tpu.memory_space<vmem>>, %arg10: memref<1x32xf32, #tpu.memory_space<vmem>>, %arg11: memref<1x8x32xf32, #tpu.memory_space<vmem>>, %arg12: memref<1x1x8x8xf32, #tpu.memory_space<vmem>>, %arg13: memref<8x32xf32, #tpu.memory_space<vmem>>) attributes {dimension_semantics = [#tpu.dimension_semantics<parallel>, #tpu.dimension_semantics<arbitrary>], iteration_bounds = array<i64: 2, 4>, scalar_prefetch = 0 : i64, scratch_operands = 1 : i64, tpu.core_type = #tpu.core_type<tc>, window_params = [{transform_indices = @transform_0, window_bounds = array<i64: 1, 8, 32>}, {transform_indices = @transform_1, window_bounds = array<i64: 1, 32, 8>}, {transform_indices = @transform_2, window_bounds = array<i64: 1, 1, 8>}, {transform_indices = @transform_3, window_bounds = array<i64: 1, 32, 8>}, {transform_indices = @transform_4, window_bounds = array<i64: 1, 1, 8>}, {transform_indices = @transform_5, window_bounds = array<i64: 1, 32, 8>}, {transform_indices = @transform_6, window_bounds = array<i64: 1, 1, 8>}, {transform_indices = @transform_7, window_bounds = array<i64: 1, 8, 32>}, {pipeline_mode = #tpu.pipeline_mode<synchronous>, transform_indices = @transform_8, window_bounds = array<i64: 1, 32>}, {transform_indices = @transform_9, window_bounds = array<i64: 1, 8, 32>}, {transform_indices = @transform_10, window_bounds = array<i64: 1, 1, 8, 8>}]} {
    %c0 = arith.constant 0 : index
    %c0_0 = arith.constant 0 : index
    %c0_1 = arith.constant 0 : index
    %0 = vector.load %arg2[%c0, %c0_0, %c0_1] : memref<1x8x32xbf16, #tpu.memory_space<vmem>>, vector<1x8x32xbf16>
    %1 = vector.shape_cast %0 : vector<1x8x32xbf16> to vector<8x32xbf16>
    %c0_2 = arith.constant 0 : index
    %c0_3 = arith.constant 0 : index
    %c0_4 = arith.constant 0 : index
    %2 = vector.load %arg3[%c0_2, %c0_3, %c0_4] : memref<1x32x8xbf16, #tpu.memory_space<vmem>>, vector<1x32x8xbf16>
    %3 = vector.shape_cast %2 : vector<1x32x8xbf16> to vector<32x8xbf16>
    %cst = arith.constant dense<0.000000e+00> : vector<8x8xf32>
    %4 = tpu.matmul %1, %3, %cst {dimension_numbers = #tpu.dot_dimension_numbers<[1], [0], [0], [1], [0, 0, 1, 1], [], []>} : vector<8x32xbf16>, vector<32x8xbf16>, vector<8x8xf32> -> vector<8x8xf32>
    %c0_5 = arith.constant 0 : index
    %c0_6 = arith.constant 0 : index
    %c0_7 = arith.constant 0 : index
    %5 = vector.load %arg4[%c0_5, %c0_6, %c0_7] : memref<1x1x8xf32, #tpu.memory_space<vmem>>, vector<1x1x8xf32>
    %6 = vector.shape_cast %5 : vector<1x1x8xf32> to vector<1x8xf32>
    %7 = vector.broadcast %6 : vector<1x8xf32> to vector<8x8xf32>
    %8 = arith.addf %4, %7 : vector<8x8xf32>
    %cst_8 = arith.constant 0.353553385 : f32
    %9 = vector.broadcast %cst_8 : f32 to vector<8x8xf32>
    %10 = arith.mulf %8, %9 : vector<8x8xf32>
    %c0_9 = arith.constant 0 : index
    %c0_10 = arith.constant 0 : index
    %c0_11 = arith.constant 0 : index
    %11 = vector.load %arg5[%c0_9, %c0_10, %c0_11] : memref<1x32x8xbf16, #tpu.memory_space<vmem>>, vector<1x32x8xbf16>
    %12 = vector.shape_cast %11 : vector<1x32x8xbf16> to vector<32x8xbf16>
    %cst_12 = arith.constant dense<0.000000e+00> : vector<8x8xf32>
    %13 = tpu.matmul %1, %12, %cst_12 {dimension_numbers = #tpu.dot_dimension_numbers<[1], [0], [0], [1], [0, 0, 1, 1], [], []>} : vector<8x32xbf16>, vector<32x8xbf16>, vector<8x8xf32> -> vector<8x8xf32>
    %c0_13 = arith.constant 0 : index
    %c0_14 = arith.constant 0 : index
    %c0_15 = arith.constant 0 : index
    %14 = vector.load %arg6[%c0_13, %c0_14, %c0_15] : memref<1x1x8xf32, #tpu.memory_space<vmem>>, vector<1x1x8xf32>
    %15 = vector.shape_cast %14 : vector<1x1x8xf32> to vector<1x8xf32>
    %16 = vector.broadcast %15 : vector<1x8xf32> to vector<8x8xf32>
    %17 = arith.addf %13, %16 : vector<8x8xf32>
    %c0_16 = arith.constant 0 : index
    %c0_17 = arith.constant 0 : index
    %c0_18 = arith.constant 0 : index
    %18 = vector.load %arg7[%c0_16, %c0_17, %c0_18] : memref<1x32x8xbf16, #tpu.memory_space<vmem>>, vector<1x32x8xbf16>
    %19 = vector.shape_cast %18 : vector<1x32x8xbf16> to vector<32x8xbf16>
    %cst_19 = arith.constant dense<0.000000e+00> : vector<8x8xf32>
    %20 = tpu.matmul %1, %19, %cst_19 {dimension_numbers = #tpu.dot_dimension_numbers<[1], [0], [0], [1], [0, 0, 1, 1], [], []>} : vector<8x32xbf16>, vector<32x8xbf16>, vector<8x8xf32> -> vector<8x8xf32>
    %c0_20 = arith.constant 0 : index
    %c0_21 = arith.constant 0 : index
    %c0_22 = arith.constant 0 : index
    %21 = vector.load %arg8[%c0_20, %c0_21, %c0_22] : memref<1x1x8xf32, #tpu.memory_space<vmem>>, vector<1x1x8xf32>
    %22 = vector.shape_cast %21 : vector<1x1x8xf32> to vector<1x8xf32>
    %23 = vector.broadcast %22 : vector<1x8xf32> to vector<8x8xf32>
    %24 = arith.addf %20, %23 : vector<8x8xf32>
    %25 = arith.truncf %10 : vector<8x8xf32> to vector<8x8xbf16>
    %26 = arith.truncf %17 : vector<8x8xf32> to vector<8x8xbf16>
    %cst_23 = arith.constant dense<0.000000e+00> : vector<8x8xf32>
    %27 = tpu.matmul %25, %26, %cst_23 {dimension_numbers = #tpu.dot_dimension_numbers<[1], [1], [0], [0], [0, 0, 1, 0], [], []>} : vector<8x8xbf16>, vector<8x8xbf16>, vector<8x8xf32> -> vector<8x8xf32>
    %cst_24 = arith.constant dense<0xFF800000> : vector<8xf32>
    %28 = vector.multi_reduction <maximumf>, %27, %cst_24 [1] : vector<8x8xf32> to vector<8xf32>
    %29 = vector.shape_cast %28 : vector<8xf32> to vector<8x1xf32>
    %30 = vector.broadcast %29 : vector<8x1xf32> to vector<8x8xf32>
    %31 = arith.subf %27, %30 : vector<8x8xf32>
    %32 = math.exp %31 : vector<8x8xf32>
    %cst_25 = arith.constant dense<0.000000e+00> : vector<8xf32>
    %33 = vector.multi_reduction <add>, %32, %cst_25 [1] : vector<8x8xf32> to vector<8xf32>
    %34 = vector.shape_cast %33 : vector<8xf32> to vector<8x1xf32>
    %35 = tpu.reciprocal %34 {approx = true} : vector<8x1xf32> -> vector<8x1xf32>
    %36 = vector.broadcast %35 : vector<8x1xf32> to vector<8x8xf32>
    %37 = arith.mulf %32, %36 : vector<8x8xf32>
    %c0_26 = arith.constant 0 : index
    %c0_27 = arith.constant 0 : index
    %c0_28 = arith.constant 0 : index
    %c0_29 = arith.constant 0 : index
    %38 = vector.load %arg12[%c0_26, %c0_27, %c0_28, %c0_29] : memref<1x1x8x8xf32, #tpu.memory_space<vmem>>, vector<1x1x8x8xf32>
    %39 = vector.shape_cast %38 : vector<1x1x8x8xf32> to vector<8x8xf32>
    %40 = vector.shape_cast %37 : vector<8x8xf32> to vector<1x1x8x8xf32>
    tpu.vector_store %arg12[%c0_26, %c0_27, %c0_28, %c0_29], %40 {strides = array<i32>} : memref<1x1x8x8xf32, #tpu.memory_space<vmem>>, vector<1x1x8x8xf32>,
    %41 = arith.truncf %37 : vector<8x8xf32> to vector<8x8xbf16>
    %42 = arith.truncf %24 : vector<8x8xf32> to vector<8x8xbf16>
    %cst_30 = arith.constant dense<0.000000e+00> : vector<8x8xf32>
    %43 = tpu.matmul %41, %42, %cst_30 {dimension_numbers = #tpu.dot_dimension_numbers<[1], [0], [0], [1], [0, 0, 1, 1], [], []>} : vector<8x8xbf16>, vector<8x8xbf16>, vector<8x8xf32> -> vector<8x8xf32>
    %44 = arith.truncf %43 : vector<8x8xf32> to vector<8x8xbf16>
    %c0_31 = arith.constant 0 : index
    %c0_32 = arith.constant 0 : index
    %c0_33 = arith.constant 0 : index
    %45 = vector.load %arg9[%c0_31, %c0_32, %c0_33] : memref<1x8x32xbf16, #tpu.memory_space<vmem>>, vector<1x8x32xbf16>
    %46 = vector.shape_cast %45 : vector<1x8x32xbf16> to vector<8x32xbf16>
    %cst_34 = arith.constant dense<0.000000e+00> : vector<8x32xf32>
    %47 = tpu.matmul %44, %46, %cst_34 {dimension_numbers = #tpu.dot_dimension_numbers<[1], [0], [0], [1], [0, 0, 1, 1], [], []>} : vector<8x8xbf16>, vector<8x32xbf16>, vector<8x32xf32> -> vector<8x32xf32>
    %c0_i32 = arith.constant 0 : i32
    %48 = arith.cmpi eq, %arg1, %c0_i32 : i32
    %49 = arith.extui %48 : i1 to i32
    %c0_i32_35 = arith.constant 0 : i32
    %50 = arith.cmpi ne, %49, %c0_i32_35 : i32
    scf.if %50 {
      %cst_41 = arith.constant 0.000000e+00 : f32
      %57 = vector.broadcast %cst_41 : f32 to vector<8x32xf32>
      %c0_42 = arith.constant 0 : index
      %c0_43 = arith.constant 0 : index
      %58 = vector.load %arg13[%c0_42, %c0_43] : memref<8x32xf32, #tpu.memory_space<vmem>>, vector<8x32xf32>
      tpu.vector_store %arg13[%c0_42, %c0_43], %57 {strides = array<i32>} : memref<8x32xf32, #tpu.memory_space<vmem>>, vector<8x32xf32>,
    } else {
    }
    %c0_36 = arith.constant 0 : index
    %c0_37 = arith.constant 0 : index
    %51 = vector.load %arg13[%c0_36, %c0_37] : memref<8x32xf32, #tpu.memory_space<vmem>>, vector<8x32xf32>
    %52 = arith.addf %51, %47 : vector<8x32xf32>
    %c0_38 = arith.constant 0 : index
    %c0_39 = arith.constant 0 : index
    %53 = vector.load %arg13[%c0_38, %c0_39] : memref<8x32xf32, #tpu.memory_space<vmem>>, vector<8x32xf32>
    tpu.vector_store %arg13[%c0_38, %c0_39], %52 {strides = array<i32>} : memref<8x32xf32, #tpu.memory_space<vmem>>, vector<8x32xf32>,
    %c3_i32 = arith.constant 3 : i32
    %54 = arith.cmpi eq, %arg1, %c3_i32 : i32
    %55 = arith.extui %54 : i1 to i32
    %c0_i32_40 = arith.constant 0 : i32
    %56 = arith.cmpi ne, %55, %c0_i32_40 : i32
    scf.if %56 {
      %c0_41 = arith.constant 0 : index
      %c0_42 = arith.constant 0 : index
      %57 = vector.load %arg13[%c0_41, %c0_42] : memref<8x32xf32, #tpu.memory_space<vmem>>, vector<8x32xf32>
      %c0_43 = arith.constant 0 : index
      %c0_44 = arith.constant 0 : index
      %58 = vector.load %arg10[%c0_43, %c0_44] : memref<1x32xf32, #tpu.memory_space<vmem>>, vector<1x32xf32>
      %59 = vector.broadcast %58 : vector<1x32xf32> to vector<8x32xf32>
      %60 = arith.addf %57, %59 : vector<8x32xf32>
      %c0_45 = arith.constant 0 : index
      %c0_46 = arith.constant 0 : index
      %c0_47 = arith.constant 0 : index
      %61 = vector.load %arg11[%c0_45, %c0_46, %c0_47] : memref<1x8x32xf32, #tpu.memory_space<vmem>>, vector<1x8x32xf32>
      %62 = vector.shape_cast %61 : vector<1x8x32xf32> to vector<8x32xf32>
      %63 = vector.shape_cast %60 : vector<8x32xf32> to vector<1x8x32xf32>
      tpu.vector_store %arg11[%c0_45, %c0_46, %c0_47], %63 {strides = array<i32>} : memref<1x8x32xf32, #tpu.memory_space<vmem>>, vector<1x8x32xf32>,
    } else {
    }
    return
  }
  func.func @transform_0(%arg0: i32, %arg1: i32) -> (i32, i32, i32) {
    %c0_i32 = arith.constant 0 : i32
    %c0_i32_0 = arith.constant 0 : i32
    %c0_i32_1 = arith.constant 0 : i32
    return %arg0, %c0_i32, %c0_i32_0 : i32, i32, i32
  }
  func.func @transform_1(%arg0: i32, %arg1: i32) -> (i32, i32, i32) {
    %c0_i32 = arith.constant 0 : i32
    %c0_i32_0 = arith.constant 0 : i32
    %c0_i32_1 = arith.constant 0 : i32
    return %arg1, %c0_i32, %c0_i32_0 : i32, i32, i32
  }
  func.func @transform_2(%arg0: i32, %arg1: i32) -> (i32, i32, i32) {
    %c0_i32 = arith.constant 0 : i32
    %c0_i32_0 = arith.constant 0 : i32
    %c0_i32_1 = arith.constant 0 : i32
    return %arg1, %c0_i32, %c0_i32_0 : i32, i32, i32
  }
  func.func @transform_3(%arg0: i32, %arg1: i32) -> (i32, i32, i32) {
    %c0_i32 = arith.constant 0 : i32
    %c0_i32_0 = arith.constant 0 : i32
    %c0_i32_1 = arith.constant 0 : i32
    return %arg1, %c0_i32, %c0_i32_0 : i32, i32, i32
  }
  func.func @transform_4(%arg0: i32, %arg1: i32) -> (i32, i32, i32) {
    %c0_i32 = arith.constant 0 : i32
    %c0_i32_0 = arith.constant 0 : i32
    %c0_i32_1 = arith.constant 0 : i32
    return %arg1, %c0_i32, %c0_i32_0 : i32, i32, i32
  }
  func.func @transform_5(%arg0: i32, %arg1: i32) -> (i32, i32, i32) {
    %c0_i32 = arith.constant 0 : i32
    %c0_i32_0 = arith.constant 0 : i32
    %c0_i32_1 = arith.constant 0 : i32
    return %arg1, %c0_i32, %c0_i32_0 : i32, i32, i32
  }
  func.func @transform_6(%arg0: i32, %arg1: i32) -> (i32, i32, i32) {
    %c0_i32 = arith.constant 0 : i32
    %c0_i32_0 = arith.constant 0 : i32
    %c0_i32_1 = arith.constant 0 : i32
    return %arg1, %c0_i32, %c0_i32_0 : i32, i32, i32
  }
  func.func @transform_7(%arg0: i32, %arg1: i32) -> (i32, i32, i32) {
    %c0_i32 = arith.constant 0 : i32
    %c0_i32_0 = arith.constant 0 : i32
    %c0_i32_1 = arith.constant 0 : i32
    return %arg1, %c0_i32, %c0_i32_0 : i32, i32, i32
  }
  func.func @transform_8(%arg0: i32, %arg1: i32) -> (i32, i32) {
    %c0_i32 = arith.constant 0 : i32
    %c0_i32_0 = arith.constant 0 : i32
    %c0_i32_1 = arith.constant 0 : i32
    return %c0_i32, %c0_i32_0 : i32, i32
  }
  func.func @transform_9(%arg0: i32, %arg1: i32) -> (i32, i32, i32) {
    %c0_i32 = arith.constant 0 : i32
    %c0_i32_0 = arith.constant 0 : i32
    %c0_i32_1 = arith.constant 0 : i32
    return %arg0, %c0_i32, %c0_i32_0 : i32, i32, i32
  }
  func.func @transform_10(%arg0: i32, %arg1: i32) -> (i32, i32, i32, i32) {
    %c0_i32 = arith.constant 0 : i32
    %c0_i32_0 = arith.constant 0 : i32
    %c0_i32_1 = arith.constant 0 : i32
    return %arg0, %arg1, %c0_i32, %c0_i32_0 : i32, i32, i32, i32
  }
}

</mosaic_0001>

<bundles_post_ra>
// kernel: tpu_custom_call.1
= control target key start
LH: loop header
LB: loop body
LE: loop exit
PB: predicated region body
PF: predicated region fallthrough
CT: control target
= control target key end

     0   :  { %s2856_s0 = inlined_call_operand.hbm [shape: bf16[2,8,32], index: 0, kind: input, shape index: {}]   ;;  %s2857_s1 = inlined_call_operand.hbm [shape: bf16[4,32,8], index: 1, kind: input, shape index: {}]   ;;  %s2858_s2 = inlined_call_operand.hbm [shape: f32[4,1,8], index: 2, kind: input, shape index: {}]   ;;  %s2859_s3 = inlined_call_operand.hbm [shape: bf16[4,32,8], index: 3, kind: input, shape index: {}]   ;;  %s2860_s4 = inlined_call_operand.hbm [shape: f32[4,1,8], index: 4, kind: input, shape index: {}]   ;;  %s2861_s5 = inlined_call_operand.hbm [shape: bf16[4,32,8], index: 5, kind: input, shape index: {}]   ;;  %s2862_s6 = inlined_call_operand.hbm [shape: f32[4,1,8], index: 6, kind: input, shape index: {}]   ;;  %s2863_s7 = inlined_call_operand.hbm [shape: bf16[4,8,32], index: 7, kind: input, shape index: {}]   ;;  %s2864_s8 = inlined_call_operand.hbm [shape: f32[1,32], index: 8, kind: input, shape index: {}]   ;;  %s2865_s9 = inlined_call_operand.hbm [shape: f32[2,8,32], index: 9, kind: output, shape index: {0}]   ;;  %s2866_s10 = inlined_call_operand.hbm [shape: f32[2,4,8,8], index: 10, kind: output, shape index: {1}]  }
   0x1   :  { %2909 = sst [smem:[#allocation45_spill]] %s2856_s0 }
   0x2   :  { %2910 = sst [smem:[#allocation46_spill]] %s2857_s1 }
   0x3   :  { %2911 = sst [smem:[#allocation47_spill]] %s2858_s2 }
   0x4   :  { %2912 = sst [smem:[#allocation48_spill]] %s2859_s3 }
   0x5   :  { %2913 = sst [smem:[#allocation49_spill]] %s2860_s4 }
   0x6   :  { %2914 = sst [smem:[#allocation50_spill]] %s2861_s5 }
   0x7   :  { %2915 = sst [smem:[#allocation51_spill]] %s2862_s6 }
   0x8   :  { %2916 = sst [smem:[#allocation52_spill]] %s2863_s7 }
   0x9   :  { %2917 = sst [smem:[#allocation53_spill]] %s2864_s8 }
   0xa   :  { %2918 = sst [smem:[#allocation54_spill]] %s2865_s9 }
   0xb   :  { %2919 = sst [smem:[#allocation55_spill]] %s2866_s10 }
   0xc   :  { %16 = vsyncpa [#allocation4], 0 }
   0xd   :  { %18 = vsyncpa [#allocation4 + $0x1], 0 }
   0xe   :  { %19 = vsyncpa [#allocation7], 0 }
   0xf   :  { %21 = vsyncpa [#allocation7 + $0x1], 0 }
  0x10   :  { %22 = vsyncpa [#allocation10], 0 }
  0x11   :  { %24 = vsyncpa [#allocation10 + $0x1], 0 }
  0x12   :  { %25 = vsyncpa [#allocation13], 0 }
  0x13   :  { %27 = vsyncpa [#allocation13 + $0x1], 0 }
  0x14   :  { %28 = vsyncpa [#allocation16], 0 }
  0x15   :  { %30 = vsyncpa [#allocation16 + $0x1], 0 }
  0x16   :  { %31 = vsyncpa [#allocation5], 0 }
  0x17   :  { %33 = vsyncpa [#allocation5 + $0x1], 0 }
  0x18   :  { %34 = vsyncpa [#allocation20], 0 }
  0x19   :  { %36 = vsyncpa [#allocation20 + $0x1], 0  ;;  %s2185_s13 = smov 0   ;;  %s2187_s14 = smov 0  }
  0x1a   :  { %s2189_s15 = smov 0   ;;  %s2191_s16 = smov 0  }
  0x1b   :  { %s2193_s17 = smov 0   ;;  %s2195_s18 = smov 0  }
  0x1c   :  { %s2197_s19 = smov 0   ;;  %s2199_s20 = smov 0  }
  0x1d   :  { %s2201_s21 = smov 0   ;;  %s2203_s22 = smov 0  }
  0x1e   :  { %s2205_s23 = smov 0   ;;  %s2207_s24 = smov 0  }
  0x1f   :  { %s2209_s25 = smov 0   ;;  %s2211_s26 = smov 0  }
  0x20 LB: > { %2920 = sst [smem:[#allocation29_spill]] %s2060_s13  ;;  %s2254_s27 = sadd.s32 4294967295, %s2112_s26   ;;  %s2112_s26 = sphi %s2211_s26, %s42_s26   ;;  %s2108_s25 = sphi %s2209_s25, %s3022_s25   ;;  %s2104_s24 = sphi %s2207_s24, %s3021_s24   ;;  %s2100_s23 = sphi %s2205_s23, %s3020_s23   ;;  %s2096_s22 = sphi %s2203_s22, %s3019_s22   ;;  %s2092_s21 = sphi %s2201_s21, %s3018_s21   ;;  %s2088_s20 = sphi %s2199_s20, %s3017_s20   ;;  %s2084_s19 = sphi %s2197_s19, %s3016_s19   ;;  %s2080_s18 = sphi %s2195_s18, %s3015_s18   ;;  %s2076_s17 = sphi %s2193_s17, %s3014_s17   ;;  %s2072_s16 = sphi %s2191_s16, %s3013_s16   ;;  %s2068_s15 = sphi %s2189_s15, %s3012_s15   ;;  %s2064_s14 = sphi %s2187_s14, %s3011_s14   ;;  %s2060_s13 = sphi %s2185_s13, %s3006_s13  }
  0x21   : > { %2921 = sst [smem:[#allocation30_spill]] %s2064_s14  ;;  %s1340_s28 = sadd.s32 4294967294, %s2112_s26  }
  0x22   : > { %2922 = sst [smem:[#allocation31_spill]] %s2076_s17  ;;  %p2869_p0 = scmp.eq.s32.totalorder %s2112_s26, 0 }
  0x23   : > { %2923 = sst [smem:[#allocation32_spill]] %s2084_s19  ;;  %p74_p1 = scmp.ne.s32.totalorder %s2088_s20, %s2084_s19 }
  0x24   : > { %2924 = sst [smem:[#allocation33_spill]] %s2096_s22  ;;  %p2870_p2 = scmp.eq.s32.totalorder %s2254_s27, 0 }
  0x25   : > { %2925 = sst [smem:[#allocation34_spill]] %s2100_s23  ;;  %p94_p3 = scmp.ne.s32.totalorder %s2080_s18, %s2076_s17 }
  0x26   : > { %2926 = sst [smem:[#allocation35_spill]] %s2254_s27  ;;  %p100_p4 = scmp.ne.s32.totalorder %s2076_s17, %s2072_s16 }
  0x27   : > { %p2873_p5 = scmp.eq.s32.totalorder %s2254_s27, 7  ;;  %p2267_p6 = por %p2870_p2, %p74_p1 }
  0x28   : > { %p2273_p7 = por %p94_p3, %p2869_p0  ;;  %p2279_p8 = por %p100_p4, %p2870_p2 }
  0x29   : > { %s2927_s29 = scalar_select %p2267_p6, 1, 0 }
  0x2a   : > { %s2930_s11 = scalar_select %p2279_p8, 1, 0 }
  0x2b   : > { %2928 = sst [smem:[#allocation36_spill]] %s2927_s29  ;;  %p307_p9 = scmp.eq.s32.totalorder %s1340_s28, 7 }
  0x2c   : > { %2931 = sst [smem:[#allocation37_spill]] %s2930_s11  ;;  %p328_p10 = scmp.ne.s32.totalorder %s2068_s15, %s2064_s14 }
  0x2d   : > { %p2286_p11 = por %p307_p9, %p74_p1  ;;  %p334_p12 = scmp.ne.s32.totalorder %s2064_s14, %s2060_s13 }
  0x2e   : > { %p2294_p13 = por %p328_p10, %p2873_p5  ;;  %p1341_p3 = scmp.ge.s32.totalorder %s2112_s26, 1 }
  0x2f   : > { %s2932_s16 = scalar_select %p2286_p11, 1, 0 }
  0x30   : > { %s2934_s19 = scalar_select %p2294_p13, 1, 0 }
  0x31   : > { %2933 = sst [smem:[#allocation38_spill]] %s2932_s16  ;;  %p2299_p4 = por %p334_p12, %p307_p9 }
  0x32   : > { %2935 = sst [smem:[#allocation39_spill]] %s2934_s19  ;;  %p342_p0 = scmp.lt.s32.totalorder %s2112_s26, 9 }
  0x33   : > { %s2936_s10 = scalar_select %p2299_p4, 1, 0 }
  0x34   : > { %p2304_p2 = pnand %p1341_p3, %p342_p0  ;;  %s2114_s12 = smov [#allocation17]  }
  0x35   : > { %2937 = sst [smem:[#allocation40_spill]] %s2936_s10  ;;  %s355_s9 = sshll.u32 %s2114_s12, 4  ;;  %s356_s9 = int_to_ptr.vmem [resolvable:$true] %s355_s9 }
  0x36   : > { %s2938_s28 = scalar_select %p2304_p2, 1, 0 }
  0x37   : > { %p1478_p1 = pneg %p2304_p2  ;;  %p2884_p10 = scmp.lt.s32.totalorder %s2112_s26, 8 }
  0x38   : > { %2939 = sst [smem:[#allocation41_spill]] %s2938_s28  ;;  %s2312_s13 = sand.u32 1, %s2112_s26  }
  0x39   : > { %p2940_p5 = scmp.eq.s32.totalorder %s2254_s27, 0  ;;  %p2324_p0 = pnand %p2884_p10, %p2273_p7 }
  0x3a   : > { %s2943_s8 = sld [smem:[#allocation53_spill]] }
  0x3b   : > { %p2316_p11 = pnand %p1478_p1, %p2940_p5 }
  0x3c   : > { %s2942_s10 = scalar_select %p2324_p0, 1, 0 }
  0x3d   : > { %p1648_p5 = pneg %p2316_p11 }
  0x40   : > { %s1646_s23 = scalar_lea.hbm %s2943_s8, 16 }
  0x41   : > { %p1647_p9 = scmp.ne.s32.totalorder %s2943_s8, %s1646_s23  ;;  %p1653_p1 = scmp.lt.u32.totalorder %s1646_s23, %s2943_s8 }
  0x43   : > { %p1649_p12 = pnand %p1648_p5, %p1647_p9 }
  0x45   : > { %p1650_p3 = pneg %p1649_p12 }
  0x47   : > { %p1655_p7 = pnand %p1653_p1, %p1650_p3 }
  0x49   : > { %1658 = shalt.err (!%p1655_p7)
}
  0x4a   : > { %s1659_s17 = scalar_lea.vmem %s356_s9, 16  ;;  %s1666_s19 = scalar_lea.vmem %s356_s9, 32 }
  0x4b   : > { %p1660_p10 = scmp.ne.s32.totalorder %s356_s9, %s1659_s17  ;;  %p1667_p8 = scmp.lt.s32.totalorder %s356_s9, %s356_s9 }
  0x4c   : > { %p1668_p6 = scmp.lt.s32.totalorder %s1666_s19, %s1659_s17 }
  0x4d   : > { %p1662_p4 = pnand %p1660_p10, %p1648_p5 }
  0x4e   : > { %p1669_p2 = por %p1668_p6, %p1667_p8 }
  0x4f   : > { %p1663_p13 = pneg %p1662_p4 }
  0x51   : > { %p1670_p0 = pnand %p1669_p2, %p1663_p13 }
  0x53   : > { %1673 = shalt.err (!%p1670_p0)
}
  0x54   : > { %1481 = dma.hbm_to_vmem [thread:$0]  (!%p2316_p11), %s2943_s8, 16, %s356_s9, [#allocation16]  }
  0x55   : > { %s2345_s23 = sand.u32 1, %s2080_s18   ;;  %s2348_s11 = sshll.u32 %s2104_s24, 8 }
  0x56   : > { %s2351_s17 = sshll.u32 %s2345_s23, 4  ;;  %s2944_s1 = sld [smem:[#allocation46_spill]] }
  0x57   : > { %s388_s19 = scalar_lea.vmem [#allocation6], %s2351_s17  ;;  %p2945_p6 = scmp.ne.s32.totalorder %s2942_s10, 0 }
  0x58   : > { %s395_s9 = sshll.u32 %s388_s19, 4  ;;  %s2360_s9 = int_to_ptr.vmem [resolvable:$true] %s395_s9 }
  0x59   : > { %p2367_p8 = pneg %p2945_p6 }
  0x5c   : > { %s2357_s16 = scalar_lea.hbm %s2944_s1, %s2348_s11  ;;  %s1679_s29 = scalar_lea.hbm %s2944_s1, 1024 }
  0x5d   : > { %s1674_s22 = scalar_lea.hbm %s2357_s16, 256  ;;  %p1680_p4 = scmp.lt.u32.totalorder %s2357_s16, %s2944_s1 }
  0x5e   : > { %p1675_p2 = scmp.ne.s32.totalorder %s2357_s16, %s1674_s22  ;;  %p1681_p10 = scmp.lt.u32.totalorder %s1679_s29, %s1674_s22 }
  0x5f   : > { %p1683_p9 = scmp.lt.u32.totalorder %s1674_s22, %s2357_s16 }
  0x60   : > { %p1677_p11 = pnand %p2367_p8, %p1675_p2  ;;  %p1682_p0 = por %p1681_p10, %p1680_p4 }
  0x62   : > { %p1678_p13 = pneg %p1677_p11  ;;  %p1684_p5 = por %p1683_p9, %p1682_p0 }
  0x64   : > { %p1685_p12 = pnand %p1684_p5, %p1678_p13 }
  0x66   : > { %1688 = shalt.err (!%p1685_p12)
}
  0x67   : > { %s1689_s14 = scalar_lea.vmem %s2360_s9, 256  ;;  %s2115_s12 = smov [#allocation6]  }
  0x68   : > { %p1690_p3 = scmp.ne.s32.totalorder %s2360_s9, %s1689_s14  ;;  %s1694_s30 = sshll.u32 %s2115_s12, 4  ;;  %s1695_s30 = int_to_ptr.vmem [resolvable:$false] %s1694_s30 }
  0x69   : > { %s1696_s28 = scalar_lea.vmem %s1695_s30, 512  ;;  %p1697_p2 = scmp.lt.s32.totalorder %s2360_s9, %s1695_s30 }
  0x6a   : > { %p1692_p1 = pnand %p1690_p3, %p2367_p8  ;;  %p1698_p11 = scmp.lt.s32.totalorder %s1696_s28, %s1689_s14 }
  0x6c   : > { %p1693_p7 = pneg %p1692_p1  ;;  %p1699_p4 = por %p1698_p11, %p1697_p2 }
  0x6e   : > { %p1700_p10 = pnand %p1699_p4, %p1693_p7 }
  0x70   : > { %1703 = shalt.err (!%p1700_p10)
}
  0x71   : > { %s2116_s29 = smov 64   ;;  %s2117_s22 = smov 4  }
  0x72   : > { %s2947_s19 = scalar_lea.sflag [#allocation7], %s2312_s13  ;;  %s2948_s3 = sld [smem:[#allocation48_spill]] }
  0x73   : > { %1488 = dma.hbm_to_vmem [thread:$0]  (!%p2945_p6), %s2357_s16, 256, %s2360_s9, %s2947_s19, %s2116_s29, %s2116_s29, %s2117_s22  }
  0x74   : > { %s426_s28 = scalar_lea.vmem [#allocation9], %s2351_s17  ;;  %s2896_s7 = scalar_lea.sflag [#allocation10], %s2312_s13 }
  0x75   : > { %s433_s1 = sshll.u32 %s426_s28, 4  ;;  %s2402_s1 = int_to_ptr.vmem [resolvable:$true] %s433_s1 }
  0x78   : > { %s2399_s30 = scalar_lea.hbm %s2948_s3, %s2348_s11  ;;  %s1709_s19 = scalar_lea.hbm %s2948_s3, 1024 }
  0x79   : > { %s1704_s6 = scalar_lea.hbm %s2399_s30, 256  ;;  %p1710_p5 = scmp.lt.u32.totalorder %s2399_s30, %s2948_s3 }
  0x7a   : > { %p1705_p13 = scmp.ne.s32.totalorder %s2399_s30, %s1704_s6  ;;  %p1711_p12 = scmp.lt.u32.totalorder %s1709_s19, %s1704_s6 }
  0x7b   : > { %p1713_p1 = scmp.lt.u32.totalorder %s1704_s6, %s2399_s30 }
  0x7c   : > { %p1707_p0 = pnand %p1705_p13, %p2367_p8  ;;  %p1712_p3 = por %p1711_p12, %p1710_p5 }
  0x7e   : > { %p1708_p9 = pneg %p1707_p0  ;;  %p1714_p7 = por %p1713_p1, %p1712_p3 }
  0x80   : > { %p1715_p2 = pnand %p1714_p7, %p1708_p9 }
  0x82   : > { %1718 = shalt.err (!%p1715_p2)
}
  0x83   : > { %s1719_s28 = scalar_lea.vmem %s2402_s1, 256  ;;  %s2118_s16 = smov [#allocation9]  }
  0x84   : > { %p1720_p11 = scmp.ne.s32.totalorder %s2402_s1, %s1719_s28  ;;  %s1724_s9 = sshll.u32 %s2118_s16, 4  ;;  %s1725_s9 = int_to_ptr.vmem [resolvable:$false] %s1724_s9 }
  0x85   : > { %s1726_s14 = scalar_lea.vmem %s1725_s9, 512  ;;  %p1727_p13 = scmp.lt.s32.totalorder %s2402_s1, %s1725_s9 }
  0x86   : > { %p1722_p4 = pnand %p1720_p11, %p2367_p8  ;;  %p1728_p0 = scmp.lt.s32.totalorder %s1726_s14, %s1719_s28 }
  0x88   : > { %p1723_p10 = pneg %p1722_p4  ;;  %p1729_p5 = por %p1728_p0, %p1727_p13 }
  0x8a   : > { %p1730_p12 = pnand %p1729_p5, %p1723_p10 }
  0x8c   : > { %1733 = shalt.err (!%p1730_p12)
}
  0x8d   : > { %1494 = dma.hbm_to_vmem [thread:$0]  (!%p2945_p6), %s2399_s30, 256, %s2402_s1, %s2896_s7, %s2116_s29, %s2116_s29, %s2117_s22  }
  0x8e   : > { %s2949_s5 = sld [smem:[#allocation50_spill]]  ;;  %s464_s28 = scalar_lea.vmem [#allocation12], %s2351_s17 }
  0x8f   : > { %s471_s16 = sshll.u32 %s464_s28, 4  ;;  %s2895_s9 = scalar_lea.sflag [#allocation13], %s2312_s13  ;;  %s2438_s16 = int_to_ptr.vmem [resolvable:$true] %s471_s16 }
  0x94   : > { %s2435_s12 = scalar_lea.hbm %s2949_s5, %s2348_s11  ;;  %s1739_s6 = scalar_lea.hbm %s2949_s5, 1024 }
  0x95   : > { %s1734_s14 = scalar_lea.hbm %s2435_s12, 256  ;;  %p1740_p7 = scmp.lt.u32.totalorder %s2435_s12, %s2949_s5 }
  0x96   : > { %p1735_p9 = scmp.ne.s32.totalorder %s2435_s12, %s1734_s14  ;;  %p1741_p2 = scmp.lt.u32.totalorder %s1739_s6, %s1734_s14 }
  0x97   : > { %p1743_p4 = scmp.lt.u32.totalorder %s1734_s14, %s2435_s12 }
  0x98   : > { %p1737_p3 = pnand %p1735_p9, %p2367_p8  ;;  %p1742_p11 = por %p1741_p2, %p1740_p7 }
  0x9a   : > { %p1738_p1 = pneg %p1737_p3  ;;  %p1744_p10 = por %p1743_p4, %p1742_p11 }
  0x9c   : > { %p1745_p13 = pnand %p1744_p10, %p1738_p1 }
  0x9e   : > { %1748 = shalt.err (!%p1745_p13)
}
  0x9f   : > { %s1749_s17 = scalar_lea.vmem %s2438_s16, 256  ;;  %s2119_s28 = smov [#allocation12]  }
  0xa0   : > { %p1750_p0 = scmp.ne.s32.totalorder %s2438_s16, %s1749_s17  ;;  %s1754_s1 = sshll.u32 %s2119_s28, 4  ;;  %s1755_s1 = int_to_ptr.vmem [resolvable:$false] %s1754_s1 }
  0xa1   : > { %s1756_s30 = scalar_lea.vmem %s1755_s1, 512  ;;  %p1757_p9 = scmp.lt.s32.totalorder %s2438_s16, %s1755_s1 }
  0xa2   : > { %p1752_p5 = pnand %p1750_p0, %p2367_p8  ;;  %p1758_p3 = scmp.lt.s32.totalorder %s1756_s30, %s1749_s17 }
  0xa4   : > { %p1753_p12 = pneg %p1752_p5  ;;  %p1759_p7 = por %p1758_p3, %p1757_p9 }
  0xa6   : > { %p1760_p2 = pnand %p1759_p7, %p1753_p12 }
  0xa8   : > { %1763 = shalt.err (!%p1760_p2)
}
  0xa9   : > { %1500 = dma.hbm_to_vmem [thread:$0]  (!%p2945_p6), %s2435_s12, 256, %s2438_s16, %s2895_s9, %s2116_s29, %s2116_s29, %s2117_s22  }
  0xaa   : > { %s51_s14 = sadd.s32 1, %s2104_s24  ;;  %s54_s6 = sadd.s32 1, %s2108_s25 }
  0xab   : > { %p52_p1 = scmp.ge.s32.totalorder %s51_s14, 4  ;;  %s61_s11 = sadd.s32 1, %s2092_s21 }
  0xac   : > { %p68_p11 = scmp.ne.s32.totalorder %s2092_s21, %s2088_s20  ;;  %p2951_p4 = scmp.eq.s32.totalorder %s2112_s26, 0 }
  0xad   : > { %s3024_s14 = smov (%p52_p1, %s51_s14), 0  ;;  %s3026_s6 = smov (!%p52_p1, %s54_s6), %s2108_s25 }
  0xae   : > { %2950 = sst [smem:[#allocation42_spill]] %s3024_s14  ;;  %p2477_p10 = por %p2951_p4, %p68_p11 }
  0xaf   : > { %s84_s29 = ssub.s32 %s2104_s24, %s3024_s14  ;;  %p56_p13 = scmp.ge.s32.totalorder %s3026_s6, 2 }
  0xb0   : > { %p85_p0 = scmp.eq.s32.totalorder %s84_s29, 0  ;;  %s87_s22 = sadd.s32 1, %s2080_s18 }
  0xb1   : > { %p2953_p5 = scmp.eq.s32.totalorder %s2254_s27, 7  ;;  %s3028_s6 = smov (%p56_p13, %s3026_s6), 0 }
  0xb2   : > { %2956 = sst [smem:[#allocation44_spill]] %s3028_s6  ;;  %s58_s17 = ssub.s32 %s2108_s25, %s3028_s6 }
  0xb3   : > { %p2486_p12 = por %p2953_p5, %p68_p11  ;;  %s366_s28 = sand.u32 1, %s2092_s21  }
  0xb4   : > { %s2493_s16 = scalar_select %p85_p0, %s2080_s18, %s87_s22  }
  0xb5   : > { %s2954_s12 = scalar_select %p2486_p12, 1, 0 }
  0xb6   : > { %p59_p9 = scmp.eq.s32.totalorder %s58_s17, 0  ;;  %s315_s1 = sor.u32 %s84_s29, %s58_s17 }
  0xb7   : > { %2955 = sst [smem:[#allocation43_spill]] %s2954_s12  ;;  %p316_p3 = scmp.eq.s32.totalorder %s315_s1, 0 }
  0xb8   : > { %s2499_s30 = scalar_select %p59_p9, %s2092_s21, %s61_s11  }
  0xb9   : > { %s2957_s9 = sadd.s32 1, %s2068_s15  ;;  %s1344_s3 = sshll.u32 %s366_s28, 2 }
  0xba   : > { %s2504_s7 = scalar_select %p316_p3, %s2068_s15, %s2957_s9  }
  0xbb   : > { %s1345_s5 = sshll.u32 %s2108_s25, 6  ;;  %s2958_s0 = sld [smem:[#allocation45_spill]] }
  0xbc   : > { %s370_s22 = scalar_lea.vmem [#allocation3], %s1344_s3  ;;  %p2959_p7 = scmp.lt.s32.totalorder %s2112_s26, 8 }
  0xbd   : > { %s377_s6 = sshll.u32 %s370_s22, 4  ;;  %s2523_s9 = sshll.u32 %s2104_s24, 4  ;;  %s2520_s6 = int_to_ptr.vmem [resolvable:$true] %s377_s6 }
  0xbe   : > { %p2516_p2 = pnand %p2959_p7, %p2477_p10 }
  0xc0   : > { %p1766_p11 = pneg %p2516_p2 }
  0xc1   : > { %s2510_s27 = scalar_lea.hbm %s2958_s0, %s1345_s5  ;;  %s367_s5 = scalar_lea.sflag [#allocation4], %s366_s28 }
  0xc2   : > { %s1764_s14 = scalar_lea.hbm %s2510_s27, 64  ;;  %s1769_s29 = scalar_lea.hbm %s2958_s0, 128 }
  0xc3   : > { %p1765_p1 = scmp.ne.s32.totalorder %s2510_s27, %s1764_s14  ;;  %p1770_p10 = scmp.lt.u32.totalorder %s2510_s27, %s2958_s0 }
  0xc4   : > { %p1771_p0 = scmp.lt.u32.totalorder %s1769_s29, %s1764_s14  ;;  %p1773_p9 = scmp.lt.u32.totalorder %s1764_s14, %s2510_s27 }
  0xc5   : > { %p1767_p4 = pnand %p1766_p11, %p1765_p1 }
  0xc6   : > { %p1772_p5 = por %p1771_p0, %p1770_p10 }
  0xc7   : > { %p1768_p13 = pneg %p1767_p4 }
  0xc8   : > { %p1774_p3 = por %p1773_p9, %p1772_p5 }
  0xca   : > { %p1775_p7 = pnand %p1774_p3, %p1768_p13 }
  0xcc   : > { %1778 = shalt.err (!%p1775_p7)
}
  0xcd   : > { %s1779_s28 = scalar_lea.vmem %s2520_s6, 64  ;;  %s2120_s1 = smov [#allocation3]  }
  0xce   : > { %p1780_p1 = scmp.ne.s32.totalorder %s2520_s6, %s1779_s28  ;;  %s1784_s22 = sshll.u32 %s2120_s1, 4  ;;  %s1785_s22 = int_to_ptr.vmem [resolvable:$false] %s1784_s22 }
  0xcf   : > { %s1786_s3 = scalar_lea.vmem %s1785_s22, 128  ;;  %p1787_p6 = scmp.lt.s32.totalorder %s2520_s6, %s1785_s22 }
  0xd0   : > { %p1782_p4 = pnand %p1780_p1, %p1766_p11  ;;  %p1788_p10 = scmp.lt.s32.totalorder %s1786_s3, %s1779_s28 }
  0xd2   : > { %p1783_p12 = pneg %p1782_p4  ;;  %p1789_p0 = por %p1788_p10, %p1787_p6 }
  0xd4   : > { %p1790_p5 = pnand %p1789_p0, %p1783_p12 }
  0xd6   : > { %1793 = shalt.err (!%p1790_p5)
}
  0xd7   : > { %1485 = dma.hbm_to_vmem [thread:$0]  (!%p2516_p2), %s2510_s27, 64, %s2520_s6, %s367_s5  }
  0xd8   : > { %s2961_s2 = sld [smem:[#allocation47_spill]]  ;;  %s408_s12 = scalar_lea.vmem [#allocation8], %s2345_s23 }
  0xd9   : > { %s415_s17 = sshll.u32 %s408_s12, 4  ;;  %s416_s17 = int_to_ptr.vmem [resolvable:$true] %s415_s17 }
  0xde   : > { %s2554_s29 = scalar_lea.hbm %s2961_s2, %s2523_s9  ;;  %s1799_s27 = scalar_lea.hbm %s2961_s2, 64 }
  0xdf   : > { %s1794_s28 = scalar_lea.hbm %s2554_s29, 16  ;;  %p1800_p2 = scmp.lt.u32.totalorder %s2554_s29, %s2961_s2 }
  0xe0   : > { %p1795_p6 = scmp.ne.s32.totalorder %s2554_s29, %s1794_s28  ;;  %p1801_p13 = scmp.lt.u32.totalorder %s1799_s27, %s1794_s28 }
  0xe1   : > { %p1803_p3 = scmp.lt.u32.totalorder %s1794_s28, %s2554_s29 }
  0xe2   : > { %p1797_p12 = pnand %p1795_p6, %p2367_p8  ;;  %p1802_p9 = por %p1801_p13, %p1800_p2 }
  0xe4   : > { %p1798_p11 = pneg %p1797_p12  ;;  %p1804_p7 = por %p1803_p3, %p1802_p9 }
  0xe6   : > { %p1805_p1 = pnand %p1804_p7, %p1798_p11 }
  0xe8   : > { %1808 = shalt.err (!%p1805_p1)
}
  0xe9   : > { %s1809_s22 = scalar_lea.vmem %s416_s17, 16  ;;  %s2121_s3 = smov [#allocation8]  }
  0xea   : > { %p1810_p4 = scmp.ne.s32.totalorder %s416_s17, %s1809_s22  ;;  %s1814_s14 = sshll.u32 %s2121_s3, 4  ;;  %s1815_s14 = int_to_ptr.vmem [resolvable:$false] %s1814_s14 }
  0xeb   : > { %s1816_s19 = scalar_lea.vmem %s1815_s14, 32  ;;  %p1817_p5 = scmp.lt.s32.totalorder %s416_s17, %s1815_s14 }
  0xec   : > { %p1812_p10 = pnand %p1810_p4, %p2367_p8  ;;  %p1818_p6 = scmp.lt.s32.totalorder %s1816_s19, %s1809_s22 }
  0xee   : > { %p1813_p0 = pneg %p1812_p10  ;;  %p1819_p12 = por %p1818_p6, %p1817_p5 }
  0xf0   : > { %p1820_p2 = pnand %p1819_p12, %p1813_p0 }
  0xf2   : > { %1823 = shalt.err (!%p1820_p2)
}
  0xf3   : > { %p2962_p13 = scmp.ne.s32.totalorder %s2942_s10, 0  ;;  %s2963_s12 = scalar_lea.sflag [#allocation7], %s2312_s13 }
  0xf4   : > { %s2964_s4 = sld [smem:[#allocation49_spill]]  ;;  %s446_s27 = scalar_lea.vmem [#allocation11], %s2345_s23 }
  0xf5   : > { %1491 = dma.hbm_to_vmem [thread:$0]  (!%p2962_p13), %s2554_s29, 16, %s416_s17, %s2963_s12  }
  0xf6   : > { %s453_s6 = sshll.u32 %s446_s27, 4  ;;  %s454_s6 = int_to_ptr.vmem [resolvable:$true] %s453_s6 }
  0xfa   : > { %s2580_s1 = scalar_lea.hbm %s2964_s4, %s2523_s9  ;;  %s1829_s29 = scalar_lea.hbm %s2964_s4, 64 }
  0xfb   : > { %s1824_s5 = scalar_lea.hbm %s2580_s1, 16  ;;  %p1830_p7 = scmp.lt.u32.totalorder %s2580_s1, %s2964_s4 }
  0xfc   : > { %p1825_p11 = scmp.ne.s32.totalorder %s2580_s1, %s1824_s5  ;;  %p1831_p1 = scmp.lt.u32.totalorder %s1829_s29, %s1824_s5 }
  0xfd   : > { %p1833_p10 = scmp.lt.u32.totalorder %s1824_s5, %s2580_s1 }
  0xfe   : > { %p1827_p9 = pnand %p1825_p11, %p2367_p8  ;;  %p1832_p4 = por %p1831_p1, %p1830_p7 }
 0x100   : > { %p1828_p3 = pneg %p1827_p9  ;;  %p1834_p0 = por %p1833_p10, %p1832_p4 }
 0x102   : > { %p1835_p5 = pnand %p1834_p0, %p1828_p3 }
 0x104   : > { %1838 = shalt.err (!%p1835_p5)
}
 0x105   : > { %s1839_s19 = scalar_lea.vmem %s454_s6, 16  ;;  %s2122_s12 = smov [#allocation11]  }
 0x106   : > { %p1840_p6 = scmp.ne.s32.totalorder %s454_s6, %s1839_s19  ;;  %s1844_s28 = sshll.u32 %s2122_s12, 4  ;;  %s1845_s28 = int_to_ptr.vmem [resolvable:$false] %s1844_s28 }
 0x107   : > { %s1846_s11 = scalar_lea.vmem %s1845_s28, 32  ;;  %p1847_p11 = scmp.lt.s32.totalorder %s454_s6, %s1845_s28 }
 0x108   : > { %p1842_p12 = pnand %p1840_p6, %p2367_p8  ;;  %p1848_p9 = scmp.lt.s32.totalorder %s1846_s11, %s1839_s19 }
 0x10a   : > { %p1843_p2 = pneg %p1842_p12  ;;  %p1849_p13 = por %p1848_p9, %p1847_p11 }
 0x10c   : > { %p1850_p1 = pnand %p1849_p13, %p1843_p2 }
 0x10e   : > { %1853 = shalt.err (!%p1850_p1)
}
 0x10f   : > { %p2965_p7 = scmp.ne.s32.totalorder %s2942_s10, 0  ;;  %s2966_s27 = scalar_lea.sflag [#allocation10], %s2312_s13 }
 0x110   : > { %s2967_s3 = sld [smem:[#allocation51_spill]]  ;;  %s484_s17 = scalar_lea.vmem [#allocation14], %s2345_s23 }
 0x111   : > { %1497 = dma.hbm_to_vmem [thread:$0]  (!%p2965_p7), %s2580_s1, 16, %s454_s6, %s2966_s27  }
 0x112   : > { %s491_s14 = sshll.u32 %s484_s17, 4  ;;  %s492_s14 = int_to_ptr.vmem [resolvable:$true] %s491_s14 }
 0x116   : > { %s2606_s29 = scalar_lea.hbm %s2967_s3, %s2523_s9  ;;  %s1859_s1 = scalar_lea.hbm %s2967_s3, 64 }
 0x117   : > { %s1854_s19 = scalar_lea.hbm %s2606_s29, 16  ;;  %p1860_p10 = scmp.lt.u32.totalorder %s2606_s29, %s2967_s3 }
 0x118   : > { %p1855_p13 = scmp.ne.s32.totalorder %s2606_s29, %s1854_s19  ;;  %p1861_p0 = scmp.lt.u32.totalorder %s1859_s1, %s1854_s19 }
 0x119   : > { %p1863_p6 = scmp.lt.u32.totalorder %s1854_s19, %s2606_s29 }
 0x11a   : > { %p1857_p3 = pnand %p1855_p13, %p2367_p8  ;;  %p1862_p5 = por %p1861_p0, %p1860_p10 }
 0x11c   : > { %p1858_p4 = pneg %p1857_p3  ;;  %p1864_p12 = por %p1863_p6, %p1862_p5 }
 0x11e   : > { %p1865_p2 = pnand %p1864_p12, %p1858_p4 }
 0x120   : > { %1868 = shalt.err (!%p1865_p2)
}
 0x121   : > { %s1869_s9 = scalar_lea.vmem %s492_s14, 16  ;;  %s2123_s27 = smov [#allocation14]  }
 0x122   : > { %p1870_p11 = scmp.ne.s32.totalorder %s492_s14, %s1869_s9  ;;  %s1874_s5 = sshll.u32 %s2123_s27, 4  ;;  %s1875_s5 = int_to_ptr.vmem [resolvable:$false] %s1874_s5 }
 0x123   : > { %s1876_s22 = scalar_lea.vmem %s1875_s5, 32  ;;  %p1877_p13 = scmp.lt.s32.totalorder %s492_s14, %s1875_s5 }
 0x124   : > { %p1872_p9 = pnand %p1870_p11, %p2367_p8  ;;  %p1878_p3 = scmp.lt.s32.totalorder %s1876_s22, %s1869_s9 }
 0x126   : > { %p1873_p1 = pneg %p1872_p9  ;;  %p1879_p7 = por %p1878_p3, %p1877_p13 }
 0x128   : > { %p1880_p0 = pnand %p1879_p7, %p1873_p1 }
 0x12a   : > { %1883 = shalt.err (!%p1880_p0)
}
 0x12b   : > { %p2968_p10 = scmp.ne.s32.totalorder %s2942_s10, 0  ;;  %s2969_s17 = scalar_lea.sflag [#allocation13], %s2312_s13 }
 0x12c   : > { %s1358_s19 = sshll.u32 %s2345_s23, 2  ;;  %s1359_s12 = sshll.u32 %s2104_s24, 6 }
 0x12d   : > { %1503 = dma.hbm_to_vmem [thread:$0]  (!%p2968_p10), %s2606_s29, 16, %s492_s14, %s2969_s17  }
 0x12e   : > { %s2970_s6 = sld [smem:[#allocation52_spill]]  ;;  %s502_s9 = scalar_lea.vmem [#allocation15], %s1358_s19 }
 0x12f   : > { %s509_s27 = sshll.u32 %s502_s9, 4  ;;  %s499_s5 = scalar_lea.sflag [#allocation16], %s2312_s13  ;;  %s510_s27 = int_to_ptr.vmem [resolvable:$true] %s509_s27 }
 0x134   : > { %s2633_s11 = scalar_lea.hbm %s2970_s6, %s1359_s12  ;;  %s1889_s14 = scalar_lea.hbm %s2970_s6, 256 }
 0x135   : > { %s1884_s22 = scalar_lea.hbm %s2633_s11, 64  ;;  %p1890_p6 = scmp.lt.u32.totalorder %s2633_s11, %s2970_s6 }
 0x136   : > { %p1885_p7 = scmp.ne.s32.totalorder %s2633_s11, %s1884_s22  ;;  %p1891_p12 = scmp.lt.u32.totalorder %s1889_s14, %s1884_s22 }
 0x137   : > { %p1893_p11 = scmp.lt.u32.totalorder %s1884_s22, %s2633_s11 }
 0x138   : > { %p1887_p4 = pnand %p1885_p7, %p2367_p8  ;;  %p1892_p2 = por %p1891_p12, %p1890_p6 }
 0x13a   : > { %p1888_p5 = pneg %p1887_p4  ;;  %p1894_p9 = por %p1893_p11, %p1892_p2 }
 0x13c   : > { %p1895_p1 = pnand %p1894_p9, %p1888_p5 }
 0x13e   : > { %1898 = shalt.err (!%p1895_p1)
}
 0x13f   : > { %s1899_s13 = scalar_lea.vmem %s510_s27, 64  ;;  %s2124_s19 = smov [#allocation15]  }
 0x140   : > { %p1900_p13 = scmp.ne.s32.totalorder %s510_s27, %s1899_s13  ;;  %s1904_s28 = sshll.u32 %s2124_s19, 4  ;;  %s1905_s28 = int_to_ptr.vmem [resolvable:$false] %s1904_s28 }
 0x141   : > { %s1906_s1 = scalar_lea.vmem %s1905_s28, 128  ;;  %p1907_p7 = scmp.lt.s32.totalorder %s510_s27, %s1905_s28 }
 0x142   : > { %p1902_p3 = pnand %p1900_p13, %p2367_p8  ;;  %p1908_p4 = scmp.lt.s32.totalorder %s1906_s1, %s1899_s13 }
 0x144   : > { %p1903_p0 = pneg %p1902_p3  ;;  %p1909_p10 = por %p1908_p4, %p1907_p7 }
 0x146   : > { %p1910_p6 = pnand %p1909_p10, %p1903_p0 }
 0x148   : > { %1913 = shalt.err (!%p1910_p6)
}
 0x149   : > { %p2971_p12 = scmp.ne.s32.totalorder %s2942_s10, 0  ;;  %s2972_s9 = sld [smem:[#allocation41_spill]] }
 0x14b   : > { %1506 = dma.hbm_to_vmem [thread:$0]  (!%p2971_p12), %s2633_s11, 64, %s510_s27, %s499_s5  }
 0x14f   : > { %p2973_p5 = scmp.ne.s32.totalorder %s2972_s9, 0 }
 0x150   : > { %s2974_s8 = sld [smem:[#allocation36_spill]] (!%p2973_p5)  ;;  %s2656_s22 = sand.u32 (!%p2973_p5), 1, %s2088_s20  }
 0x151   : > { %518 = sbr.rel (%p2973_p5) target bundleno = 1630 (0x65e), region = 56  ;;  %s1361_s23 = sshll.u32 (!%p2973_p5), %s2656_s22, 2 }
 0x152   : > { %s521_s29 = scalar_lea.sflag (!%p2973_p5), [#allocation4], %s2656_s22  ;;  %s2660_s14 = scalar_lea.vmem (!%p2973_p5), [#allocation3], %s1361_s23 }
 0x156   : > { %p2975_p8 = scmp.ne.s32.totalorder (!%p2973_p5), %s2974_s8, 0 }
 0x158   : > { %2027 = dma.done.wait (%p2975_p8), %s521_s29, 64  }
 0x159   : > { %2029 = vsyncadd (%p2975_p8), %s521_s29, 4294967232  ;;  %s2976_s10 = sld [smem:[#allocation35_spill]]  ;;  %s2977_s11 = sld [smem:[#allocation31_spill]] }
 0x15a   : > { %s2978_s27 = sld [smem:[#allocation37_spill]] }
 0x15f   : > { %s529_s5 = sand.u32 1, %s2976_s10   ;;  %s2668_s17 = sand.u32 1, %s2977_s11  }
 0x160   : > { %s2671_s12 = sshll.u32 %s2668_s17, 4  ;;  %s530_s13 = scalar_lea.sflag [#allocation7], %s529_s5 }
 0x161   : > { %p2979_p10 = scmp.ne.s32.totalorder %s2978_s27, 0 }
 0x163   : > { %2031 = dma.done.wait (%p2979_p10), %s530_s13, 272  }
 0x164   : > { %2033 = vsyncadd (%p2979_p10), %s530_s13, 4294967024  ;;  %s547_s1 = scalar_lea.sflag [#allocation10], %s529_s5  ;;  %s550_s9 = scalar_lea.vmem [#allocation9], %s2671_s12 }
 0x165   : > { %2035 = dma.done.wait (%p2979_p10), %s547_s1, 272  }
 0x166   : > { %2037 = vsyncadd (%p2979_p10), %s547_s1, 4294967024  ;;  %s558_s8 = scalar_lea.vmem [#allocation11], %s2668_s17  ;;  %s564_s23 = scalar_lea.sflag [#allocation13], %s529_s5 }
 0x167   : > { %s567_s29 = scalar_lea.vmem [#allocation12], %s2671_s12 }
 0x168   : > { %2039 = dma.done.wait (%p2979_p10), %s564_s23, 272  }
 0x169   : > { %2041 = vsyncadd (%p2979_p10), %s564_s23, 4294967024  ;;  %s1365_s11 = sshll.u32 %s2668_s17, 2  ;;  %s575_s13 = scalar_lea.vmem [#allocation14], %s2668_s17 }
 0x16a   : > { %s581_s28 = scalar_lea.sflag [#allocation16], %s529_s5  ;;  %s2692_s19 = scalar_lea.vmem [#allocation15], %s1365_s11 }
 0x16b   : > { %2043 = dma.done.wait (%p2979_p10), %s581_s28, 64  }
 0x16c   : > { %2045 = vsyncadd (%p2979_p10), %s581_s28, 4294967232  ;;  %p2980_p2 = scmp.eq.s32.totalorder %s2976_s10, 0 }
 0x16e   : > { %2047 = dma.done.wait (%p2980_p2), [#allocation16], 16   ;;  %p2981_p11 = pmov %p2980_p2 }
 0x16f   : > { %s1367_s1 = sshll.u32 %s2656_s22, 3  ;;  %v2125_v0 = vmov 0.0   ;;  %vm2126_vm0 = vmmov 0   ;;  %v1636_v1 = vld [vmem:[%s550_s9] sm:$0xff]   ;;  %s2982_s27 = scalar_lea.vmem [#allocation6], %s2671_s12  ;;  %v1638_v3 = vld [vmem:[%s550_s9 + $0x8] sm:$0xff]  }
 0x170   : > { %2049 = vsyncadd (%p2981_p11), [#allocation16], 4294967280  ;;  %1420 = vmatprep.subr.bf16.mxu1 %v2125_v0  ;;  %1412 = vmatprep.subr.bf16.mxu0 %v2125_v0  ;;  %v1637_v2 = vld [vmem:[%s2982_s27] sm:$0xff]   ;;  %s2983_s10 = smov %s2982_s27  ;;  %v663_v5 = vld [vmem:[%s2660_s14] sm:$0xf]  ;;  %vm687_vm1 = vcmask 261120  }
 0x171   : > { %1424 = vmatprep.mubr.msk.bf16.mxu1 %vm2126_vm0, %v2125_v0  ;;  %1416 = vmatprep.mubr.msk.bf16.mxu0 %vm2126_vm0, %v2125_v0  ;;  %v1639_v4 = vld [vmem:[%s2983_s10 + $0x8] sm:$0xff]   ;;  %v1373_v6 = vld [vmem:[%s558_s8] ss:$0 sm:$0xff]  ;;  %s2984_s5 = scalar_lea.vmem [#allocation8], %s2668_s17  ;;  %vm860_vm2 = vcmask 64512   ;;  %s2985_s14 = sld [smem:[#allocation30_spill]] }
 0x172   : > { %1421 = vmatpush3.bf16.msra.mxu1 %v1636_v1  ;;  %1413 = vmatpush3.bf16.msra.mxu0 %v1637_v2  ;;  %v1369_v7 = vld [vmem:[%s2984_s5] ss:$0 sm:$0xff]  ;;  %v1640_v22 = vld [vmem:[%s567_s29] sm:$0xff]   ;;  %vm924_vm3 = vcmask 1043456   ;;  %s2986_s9 = sld [smem:[#allocation33_spill]] }
 0x173   : > { %1422 = vmatprep.subr.bf16.mxu1 %v2125_v0  ;;  %1414 = vmatprep.subr.bf16.mxu0 %v2125_v0  ;;  %v1641_v23 = vld [vmem:[%s567_s29 + $0x8] sm:$0xff]   ;;  %v969_v42 = vld [vmem:[%s2692_s19] sm:$0xf]  ;;  %s654_s19 = scalar_lea.vmem [#allocation18], %s1367_s1 }
 0x174   : > { %v1377_v37 = vld [vmem:[%s575_s13] ss:$0 sm:$0xff]  ;;  %v974_v43 = vsel %vm924_vm3, %v969_v42, 0 }
 0x176   : > { %1423 = vmatpush3.bf16.msra.mxu1 %v1638_v3  ;;  %1415 = vmatpush3.bf16.msra.mxu0 %v1639_v4 }
 0x177   : > { %1436 = vmatprep.subr.bf16.mxu1 %v2125_v0  ;;  %1428 = vmatprep.subr.bf16.mxu0 %v2125_v0  ;;  %s2905_s12 = sand.u32 1, %s2985_s14  }
 0x178   : > { %s2735_s28 = sshll.u32 %s2905_s12, 3  ;;  %p1384_p9 = scmp.ne.s32.totalorder %s2986_s9, 0 }
 0x179   : > { %1425 = vmatmul.mubr.msk.bf16.vlgmr.msra.gmra.mrb[0].mxu1 %vm687_vm1, %v663_v5  ;;  %1417 = vmatmul.mubr.msk.bf16.vlgmr.msra.gmra.mrb[0].mxu0 %vm687_vm1, %v663_v5  ;;  %s2906_s17 = scalar_lea.vmem [#allocation19], %s2735_s28  ;;  %v2127_v57 = vmov (!%p1384_p9), 0.0  }
 0x17a   : > { %1438 = vmatprep.mubr.msk.bf16.mxu1 %vm2126_vm0, %v2125_v0  ;;  %1432 = vmatprep.mubr.msk.bf16.mxu0 %vm2126_vm0, %v2125_v0  ;;  %1020 = vst.msk [vmem:[#allocation2] sm:$0xff] (!%p1384_p9), %vm687_vm1, %v2127_v57 }
 0x17b   : > { %1429 = vmatpush3.bf16.msra.mxu0 %v1640_v22 }
 0x17c   : > { %1430 = vmatprep.subr.bf16.mxu0 %v2125_v0 }
 0x17f   : > { %1431 = vmatpush3.bf16.msra.mxu0 %v1641_v23 }
 0x180   : > { %1442 = vmatprep.subr.bf16.mxu0 %v2125_v0 }
 0x182   : > { %1433 = vmatmul.mubr.msk.bf16.vlgmr.msra.gmra.mrb[4].mxu0 %vm687_vm1, %v663_v5 }
 0x183   : > { %1444 = vmatprep.mubr.msk.bf16.mxu0 %vm2126_vm0, %v2125_v0 }
 0x24c   : > { %v789_v8 = vpop.f32.mrb[0].mxu1  ;;  %v725_v11 = vpop.f32.mrb[0].mxu0 }
 0x24d   : > { %v790_v9 = vadd.f32 %v1373_v6, %v789_v8  ;;  %v1426_v10 = vpop.f32.mrb[1].mxu1  ;;  %v726_v13 = vadd.f32 %v1369_v7, %v725_v11  ;;  %v1418_v14 = vpop.f32.mrb[1].mxu0 }
 0x24e   : > { %v792_v12 = vpop.f32.mrb[2].mxu1  ;;  %v728_v17 = vpop.f32.mrb[2].mxu0 }
 0x24f   : > { %v859_v15 = vpack.c.bf16 %v790_v9, %v790_v9  ;;  %v1427_v16 = vpop.f32.mrb[3].mxu1  ;;  %v1419_v18 = vpop.f32.mrb[3].mxu0  ;;  %v731_v20 = vmul.f32 0.35355338, %v726_v13 }
 0x251   : > { %v865_v19 = vsel %vm860_vm2, %v859_v15, 0  ;;  %v858_v21 = vpack.c.bf16 %v731_v20, %v731_v20 }
 0x252   : > { %1437 = vmatpush3.bf16.xpose.msra.mxu1 %v865_v19 }
 0x253   : > { %1448 = vmatprep.subr.bf16.mxu1 %v2125_v0 }
 0x255   : > { %v852_v34 = vpop.f32.mrb[4].mxu0 }
 0x256   : > { %v1434_v35 = vpop.f32.mrb[5].mxu0  ;;  %v853_v39 = vadd.f32 %v1377_v37, %v852_v34 }
 0x257   : > { %v855_v36 = vpop.f32.mrb[6].mxu0 }
 0x258   : > { %v1435_v38 = vpop.f32.mrb[7].mxu0  ;;  %v920_v40 = vpack.c.bf16 %v853_v39, %v853_v39 }
 0x259   : > { %1439 = vmatmul.mubr.msk.bf16.vlgmr.msra.gmra.mrb[4].mxu1 %vm860_vm2, %v858_v21 }
 0x25a   : > { %1450 = vmatprep.mubr.msk.bf16.mxu1 %vm2126_vm0, %v2125_v0  ;;  %v926_v41 = vsel %vm924_vm3, %v920_v40, 0  ;;  %1449 = vmatpush3.bf16.msra.mxu1 %v974_v43 }
 0x25b   : > { %1443 = vmatpush3.bf16.msra.mxu0 %v926_v41 }
 0x32c   : > { %v901_v24 = vpop.f32.mrb[4].mxu1 }
 0x32d   : > { %v1440_v25 = vpop.f32.mrb[5].mxu1  ;;  %v907_v26 = vsel %vm860_vm2, %v901_v24, -inf }
 0x32e   : > { %908 = vmax.xlane.f32.xlu0 %v907_v26  ;;  %v904_v27 = vpop.f32.mrb[6].mxu1 }
 0x32f   : > { %v1441_v28 = vpop.f32.mrb[7].mxu1 }
 0x3bb   : > { %v909_v29 = vpop.xlane.xlu0 %908 }
 0x3bc   : > { %v910_v30 = vsub.f32 %v901_v24, %v909_v29 }
 0x3be   : > { %v911_v31 = vmul.f32 1.442695, %v910_v30 }
 0x3c0   : > { %1642 = vpow2.f32 %v911_v31 }
 0x3ca   : > { %v1643_v32 = vpop.eup %1642 }
 0x3cb   : > { %v913_v33 = vsel %vm860_vm2, %v1643_v32, 0.0 }
 0x3cc   : > { %914 = vadd.xlane.f32.xlu0 %v913_v33 }
 0x459   : > { %v915_v44 = vpop.xlane.xlu0 %914 }
 0x45a   : > { %1644 = vrcp.f32 %v915_v44 }
 0x464   : > { %v1645_v45 = vpop.eup %1644 }
 0x465   : > { %v917_v46 = vmul.f32 %v1645_v45, %v1643_v32 }
 0x467   : > { %918 = vst.msk [vmem:[%s2906_s17] sm:$0xff] %vm860_vm2, %v917_v46  ;;  %v919_v47 = vpack.c.bf16 %v917_v46, %v917_v46 }
 0x469   : > { %1445 = vmatmul.mubr.msk.bf16.vlgmr.msra.gmra.mrb[8].mxu0 %vm860_vm2, %v919_v47 }
 0x53c   : > { %v962_v48 = vpop.f32.mrb[8].mxu0 }
 0x53d   : > { %v968_v49 = vpack.c.bf16 %v962_v48, %v962_v48  ;;  %v1446_v50 = vpop.f32.mrb[9].mxu0 }
 0x53e   : > { %v965_v51 = vpop.f32.mrb[10].mxu0 }
 0x53f   : > { %v1447_v52 = vpop.f32.mrb[11].mxu0  ;;  %1451 = vmatmul.mubr.msk.bf16.vlgmr.msra.gmra.mrb[8].mxu1 %vm860_vm2, %v968_v49 }
 0x60f   : > { %1019 = sbr.rel (%p1384_p9) target bundleno = 1558 (0x616), region = 96 }
 0x612   : > { %v1010_v53 = vpop.f32.mrb[8].mxu1 }
 0x613   : > { %v1452_v54 = vpop.f32.mrb[9].mxu1 }
 0x614   : > { %v1013_v55 = vpop.f32.mrb[10].mxu1 }
 0x615   : > { %v1453_v56 = vpop.f32.mrb[11].mxu1 }
 0x616 PF: > { %v1021_v58 = vld [vmem:[#allocation2] sm:$0xff]  ;;  %s2987_s8 = sld [smem:[#allocation33_spill]] }
 0x617   : > { %v1022_v59 = vadd.f32 %v1021_v58, %v1010_v53 }
 0x619   : > { %1023 = vst.msk [vmem:[#allocation2] sm:$0xff] %vm687_vm1, %v1022_v59 }
 0x61c   : > { %p1385_p1 = scmp.ne.s32.totalorder %s2987_s8, 3 }
 0x61d   : > { %v1386_v61 = vld [vmem:[#allocation17] ss:$0 sm:$0xff] (!%p1385_p1) }
 0x61e   : > { %1027 = sbr.rel (%p1385_p1) target bundleno = 1573 (0x625), region = 100 }
 0x620   : > { %v1028_v60 = vld [vmem:[#allocation2] sm:$0xff] (!%p1385_p1) }
 0x621   : > { %v1036_v62 = vadd.f32 (!%p1385_p1), %v1386_v61, %v1028_v60 }
 0x623   : > { %1037 = vst.msk [vmem:[%s654_s19] sm:$0xff] (!%p1385_p1), %vm687_vm1, %v1036_v62 }
 0x625 PF: > { %s2988_s23 = sld [smem:[#allocation34_spill]]  ;;  %s2990_s27 = sld [smem:[#allocation54_spill]] }
 0x626   : > { %s2989_s29 = sld [smem:[#allocation43_spill]]  ;;  %s1057_s5 = sshll.u32 %s654_s19, 4  ;;  %s1058_s5 = int_to_ptr.vmem [resolvable:$true] %s1057_s5 }
 0x627   : > { %s1039_s14 = scalar_lea.sflag [#allocation5], %s2656_s22  ;;  %s1914_s9 = scalar_lea.vmem %s1058_s5, 128 }
 0x628   : > { %p1915_p13 = scmp.ne.s32.totalorder %s1058_s5, %s1914_s9  ;;  %s2128_s8 = smov [#allocation18]  }
 0x629   : > { %s1918_s12 = sshll.u32 %s2128_s8, 4  ;;  %s1919_s12 = int_to_ptr.vmem [resolvable:$false] %s1918_s12 }
 0x62a   : > { %s1920_s17 = scalar_lea.vmem %s1919_s12, 256  ;;  %p1921_p4 = scmp.lt.s32.totalorder %s1058_s5, %s1919_s12 }
 0x62b   : > { %s1389_s11 = sshll.u32 %s2988_s23, 7  ;;  %p1922_p6 = scmp.lt.s32.totalorder %s1920_s17, %s1914_s9 }
 0x62c   : > { %s2754_s10 = scalar_lea.hbm %s2990_s27, %s1389_s11  ;;  %p2991_p3 = scmp.ne.s32.totalorder %s2989_s29, 0 }
 0x62d   : > { %p1923_p12 = por %p1922_p6, %p1921_p4 }
 0x62e   : > { %p1916_p0 = pnand %p1915_p13, %p2991_p3 }
 0x630   : > { %p1917_p7 = pneg %p1916_p0 }
 0x632   : > { %p1924_p5 = pnand %p1923_p12, %p1917_p7 }
 0x634   : > { %1927 = shalt.err (!%p1924_p5)
}
 0x635   : > { %s1928_s22 = scalar_lea.hbm %s2754_s10, 128  ;;  %s1932_s13 = scalar_lea.hbm %s2990_s27, 256 }
 0x636   : > { %p1929_p8 = scmp.ne.s32.totalorder %s2754_s10, %s1928_s22  ;;  %p1933_p11 = scmp.lt.u32.totalorder %s2754_s10, %s2990_s27 }
 0x637   : > { %p1934_p9 = scmp.lt.u32.totalorder %s1932_s13, %s1928_s22  ;;  %p1936_p13 = scmp.lt.u32.totalorder %s1928_s22, %s2754_s10 }
 0x638   : > { %p1930_p10 = pnand %p1929_p8, %p2991_p3 }
 0x639   : > { %p1935_p1 = por %p1934_p9, %p1933_p11 }
 0x63a   : > { %p1931_p2 = pneg %p1930_p10 }
 0x63b   : > { %p1937_p0 = por %p1936_p13, %p1935_p1 }
 0x63d   : > { %p1938_p7 = pnand %p1937_p0, %p1931_p2 }
 0x63f   : > { %1941 = shalt.err (!%p1938_p7)
}
 0x640   : > { %s2992_s17 = sld [smem:[#allocation33_spill]]  ;;  %s2993_s9 = sld [smem:[#allocation30_spill]] }
 0x641   : > { %s2994_s8 = sld [smem:[#allocation39_spill]]  ;;  %s1390_s19 = sshll.u32 %s2988_s23, 2 }
 0x642   : > { %1474 = dma.vmem_to_hbm [thread:$0]  (%p2991_p3), %s1058_s5, 128, %s2754_s10, %s1039_s14  }
 0x643   : > { %s2995_s11 = scalar_lea.vmem [#allocation19], %s2735_s28  ;;  %s2996_s29 = sld [smem:[#allocation55_spill]] }
 0x644   : > { %s1072_s0 = sshll.u32 %s2995_s11, 4  ;;  %s2129_s28 = smov [#allocation19]   ;;  %s2778_s0 = int_to_ptr.vmem [resolvable:$true] %s1072_s0 }
 0x645   : > { %s1942_s6 = scalar_lea.vmem %s2778_s0, 128  ;;  %s1946_s23 = sshll.u32 %s2129_s28, 4  ;;  %s1947_s23 = int_to_ptr.vmem [resolvable:$false] %s1946_s23 }
 0x646   : > { %s1068_s1 = sadd.s32 %s2992_s17, %s1390_s19  ;;  %s2997_s3 = sand.u32 1, %s2993_s9  }
 0x647   : > { %s1391_s22 = sshll.u32 %s1068_s1, 7  ;;  %s1044_s4 = scalar_lea.sflag [#allocation20], %s2997_s3 }
 0x648   : > { %p1943_p4 = scmp.ne.s32.totalorder %s2778_s0, %s1942_s6  ;;  %p2998_p6 = scmp.ne.s32.totalorder %s2994_s8, 0 }
 0x649   : > { %s1070_s2 = scalar_lea.hbm %s2996_s29, %s1391_s22  ;;  %s1948_s10 = scalar_lea.vmem %s1947_s23, 256 }
 0x64a   : > { %p1944_p3 = pnand %p1943_p4, %p2998_p6  ;;  %p1949_p5 = scmp.lt.s32.totalorder %s2778_s0, %s1947_s23 }
 0x64b   : > { %p1950_p8 = scmp.lt.s32.totalorder %s1948_s10, %s1942_s6 }
 0x64c   : > { %p1945_p12 = pneg %p1944_p3 }
 0x64d   : > { %p1951_p10 = por %p1950_p8, %p1949_p5 }
 0x64f   : > { %p1952_p2 = pnand %p1951_p10, %p1945_p12 }
 0x651   : > { %1955 = shalt.err (!%p1952_p2)
}
 0x652   : > { %s1956_s5 = scalar_lea.hbm %s1070_s2, 128  ;;  %s1960_s17 = scalar_lea.hbm %s2996_s29, 1024 }
 0x653   : > { %p1957_p11 = scmp.ne.s32.totalorder %s1070_s2, %s1956_s5  ;;  %p1961_p13 = scmp.lt.u32.totalorder %s1070_s2, %s2996_s29 }
 0x654   : > { %p1962_p0 = scmp.lt.u32.totalorder %s1960_s17, %s1956_s5  ;;  %p1964_p4 = scmp.lt.u32.totalorder %s1956_s5, %s1070_s2 }
 0x655   : > { %p1958_p9 = pnand %p1957_p11, %p2998_p6 }
 0x656   : > { %p1963_p7 = por %p1962_p0, %p1961_p13 }
 0x657   : > { %p1959_p1 = pneg %p1958_p9 }
 0x658   : > { %p1965_p3 = por %p1964_p4, %p1963_p7 }
 0x65a   : > { %p1966_p12 = pnand %p1965_p3, %p1959_p1 }
 0x65c   : > { %1969 = shalt.err (!%p1966_p12)
}
 0x65d   : > { %1475 = dma.vmem_to_hbm [thread:$0]  (%p2998_p6), %s2778_s0, 128, %s1070_s2, %s1044_s4  }
 0x65e PF: > { %s2999_s6 = sld [smem:[#allocation32_spill]]  ;;  %s3000_s11 = sld [smem:[#allocation38_spill]] }
 0x65f   : > { %p1517_p5 = scmp.ge.s32.totalorder %s2112_s26, 2 }
 0x664   : > { %s1084_s1 = sand.u32 1, %s2999_s6   ;;  %p3001_p8 = scmp.ne.s32.totalorder %s3000_s11, 0 }
 0x665   : > { %s1085_s22 = scalar_lea.sflag [#allocation5], %s1084_s1 }
 0x666   : > { %p1508_p10 = pnand %p1517_p5, %p3001_p8 }
 0x668   : > { %2051 = dma.done.wait (!%p1508_p10), %s1085_s22, 128  }
 0x669   : > { %2053 = vsyncadd (!%p1508_p10), %s1085_s22, 4294967168  ;;  %s3002_s13 = sld [smem:[#allocation29_spill]]  ;;  %s3003_s12 = sld [smem:[#allocation40_spill]] }
 0x66f   : > { %s1093_s28 = sand.u32 1, %s3002_s13   ;;  %p3004_p2 = scmp.ne.s32.totalorder %s3003_s12, 0 }
 0x670   : > { %s1094_s23 = scalar_lea.sflag [#allocation20], %s1093_s28 }
 0x671   : > { %p1511_p11 = pnand %p1517_p5, %p3004_p2 }
 0x673   : > { %2055 = dma.done.wait (!%p1511_p11), %s1094_s23, 128  }
 0x674   : > { %2057 = vsyncadd (!%p1511_p11), %s1094_s23, 4294967168  ;;  %s42_s26 = sadd.s32 1, %s2112_s26   ;;  %s3006_s13 = sld [smem:[#allocation30_spill]] }
 0x675   : > { %p2809_p6 = scmp.ge.s32.totalorder %s42_s26, 10   ;;  %s3007_s2 = sld [smem:[#allocation31_spill]] }
 0x676   : > { %s3008_s4 = smov %s2493_s16  ;;  %s3009_s8 = sld [smem:[#allocation42_spill]] }
 0x677   : > { %s3010_s10 = sld [smem:[#allocation44_spill]]  ;;  %s3011_s14 = smov %s2068_s15 }
 0x678   : > { %s3012_s15 = smov %s2504_s7  ;;  %s3014_s17 = smov %s2080_s18 }
 0x679   : > { %s3015_s18 = smov %s3008_s4  ;;  %s3016_s19 = smov %s2088_s20 }
 0x67a   : > { %s3017_s20 = smov %s2092_s21  ;;  %s3018_s21 = smov %s2499_s30 }
 0x67b   : > { %s3013_s16 = smov %s3007_s2  ;;  %s3019_s22 = smov %s2104_s24 }
 0x67c   : > { %s3020_s23 = smov %s2108_s25  ;;  %s3021_s24 = smov %s3009_s8 }
 0x67d   : > { %s3022_s25 = smov %s3010_s10  ;;  %41 = sbr.rel (!%p2809_p6) target bundleno = 32 (0x20), region = 215 }
 0x684   :  { %1099 = vsyncpa [#allocation4], 1 }
 0x685   :  { %1101 = vsyncpa [#allocation4 + $0x1], 1 }
 0x686   :  { %1102 = vsyncpa [#allocation7], 1 }
 0x687   :  { %1104 = vsyncpa [#allocation7 + $0x1], 1 }
 0x688   :  { %1105 = vsyncpa [#allocation10], 1 }
 0x689   :  { %1107 = vsyncpa [#allocation10 + $0x1], 1 }
 0x68a   :  { %1108 = vsyncpa [#allocation13], 1 }
 0x68b   :  { %1110 = vsyncpa [#allocation13 + $0x1], 1 }
 0x68c   :  { %1111 = vsyncpa [#allocation16], 1 }
 0x68d   :  { %1113 = vsyncpa [#allocation16 + $0x1], 1 }
 0x68e   :  { %1114 = vsyncpa [#allocation5], 1 }
 0x68f   :  { %1116 = vsyncpa [#allocation5 + $0x1], 1 }
 0x690   :  { %1117 = vsyncpa [#allocation20], 1 }
 0x691   :  { %1119 = vsyncpa [#allocation20 + $0x1], 1 }

</bundles_post_ra>
